<compile_context>
chip_gen: v7x
topology: tpu7x:2x2x1
jax: 0.10.0
libtpu: 0.0.40
codegen_flags: <defaults>
</compile_context>

<pallas_src>
import jax
import jax.numpy as jnp
from jax.experimental import pallas as pl
from jax.experimental.pallas import tpu as pltpu

EPS = 1e-5  # torch.nn.InstanceNorm2d default eps


def _make_kernel(W):
    """Kernel factory; W (image width) is needed for the flattened-shift offsets."""

    def kernel(x_ref, w1_ref, w2_ref, g1_ref, be1_ref, g2_ref, be2_ref,
               mask_ref, o_ref, patches_ref):
        # x_ref       : (1, C, HW)   one NCHW image, spatial flattened onto lanes
        # w*_ref      : (C, 9*C)     conv weights, columns ordered (ky, kx, c_in)
        # g*/be*_ref  : (C, 1)       instance-norm affine parameters
        # mask_ref    : (9, HW)      0/1 validity mask per 3x3 tap ('same' padding)
        # o_ref       : (1, C, HW)
        # patches_ref : (9*C, HW)    VMEM scratch holding the im2col matrix
        C = x_ref.shape[1]
        HW = x_ref.shape[2]
        inv_hw = 1.0 / HW

        x = x_ref[0]              # (C, HW)
        masks = mask_ref[...]     # (9, HW)

        def conv3x3(v, w):
            # Build im2col rows with lane rolls + border masks, then one matmul.
            for tap in range(9):
                dy, dx = tap // 3 - 1, tap % 3 - 1
                off = dy * W + dx
                if off == 0:
                    # center tap: no shift, mask is all ones -> plain copy
                    patches_ref[tap * C:(tap + 1) * C, :] = v
                else:
                    sh = pltpu.roll(v, shift=(-off) % HW, axis=1)
                    # zero positions whose (y+dy, x+dx) falls outside the image
                    patches_ref[tap * C:(tap + 1) * C, :] = sh * masks[tap:tap + 1, :]
            # (C, 9C) x (9C, HW) -> (C, HW); conv bias omitted (cancelled by inst-norm)
            return jnp.dot(w, patches_ref[...], preferred_element_type=jnp.float32)

        def inst_norm(y, g, b):
            # single-pass per-channel stats over the spatial (lane) axis,
            # folded into per-channel scale/shift -> one FMA per element
            s1 = jnp.sum(y, axis=1, keepdims=True)
            s2 = jnp.sum(y * y, axis=1, keepdims=True)
            mu = s1 * inv_hw
            var = s2 * inv_hw - mu * mu
            scale = jax.lax.rsqrt(var + EPS) * g          # (C, 1), EUP rsqrt
            shift = b - mu * scale                        # (C, 1)
            return y * scale + shift

        out = conv3x3(x, w1_ref[...])
        out = jnp.maximum(inst_norm(out, g1_ref[...], be1_ref[...]), 0.0)
        out = conv3x3(out, w2_ref[...])
        out = inst_norm(out, g2_ref[...], be2_ref[...])
        o_ref[0] = jnp.maximum(out + x, 0.0)

    return kernel


def residual_block(x_nchw, params):
    """x_nchw: (N, C, H, W) float32; params in PyTorch conventions (OIHW weights)."""
    N, C, H, W = x_nchw.shape
    HW = H * W
    x = x_nchw.reshape(N, C, HW).astype(jnp.float32)   # free reshape, stays NCHW

    def to_w2d(w):  # OIHW (C,C,3,3) -> (C, 9C), cols ordered (ky, kx, c_in)
        return jnp.transpose(w, (0, 2, 3, 1)).reshape(C, 9 * C).astype(jnp.float32)

    w1 = to_w2d(params["w1"])
    w2 = to_w2d(params["w2"])
    g1 = params["g1"].reshape(C, 1).astype(jnp.float32)
    g2 = params["g2"].reshape(C, 1).astype(jnp.float32)
    be1 = params["be1"].reshape(C, 1).astype(jnp.float32)
    be2 = params["be2"].reshape(C, 1).astype(jnp.float32)
    # params["b1"], params["b2"] (conv biases) are intentionally NOT passed:
    # a per-channel constant is exactly cancelled by InstanceNorm's mean subtraction.

    # Precompute the 9 'same'-padding validity masks (one row per 3x3 tap).
    yy = jnp.repeat(jnp.arange(H), W)
    xx = jnp.tile(jnp.arange(W), H)
    rows = []
    for tap in range(9):
        dy, dx = tap // 3 - 1, tap % 3 - 1
        valid = (yy + dy >= 0) & (yy + dy < H) & (xx + dx >= 0) & (xx + dx < W)
        rows.append(valid)
    masks = jnp.stack(rows, axis=0).astype(jnp.float32)   # (9, HW)

    vec_spec = pl.BlockSpec((C, 1), lambda n: (0, 0))
    w_spec = pl.BlockSpec((C, 9 * C), lambda n: (0, 0))

    out = pl.pallas_call(
        _make_kernel(W),
        out_shape=jax.ShapeDtypeStruct((N, C, HW), jnp.float32),
        grid=(N,),
        in_specs=[
            pl.BlockSpec((1, C, HW), lambda n: (n, 0, 0)),   # x (lane-dense)
            w_spec, w_spec,
            vec_spec, vec_spec, vec_spec, vec_spec,
            pl.BlockSpec((9, HW), lambda n: (0, 0)),         # masks
        ],
        out_specs=pl.BlockSpec((1, C, HW), lambda n: (n, 0, 0)),
        scratch_shapes=[pltpu.VMEM((9 * C, HW), jnp.float32)],   # im2col scratch
        compiler_params=pltpu.CompilerParams(
            dimension_semantics=("parallel",)),  # v7x: shard batch over 2 TCs
    )(x, w1, w2, g1, be1, g2, be2, masks)

    return out.reshape(N, C, H, W)


def _reference(x, p):
    """Pure-JAX reference replicating the PyTorch forward (NCHW, with biases)."""
    def conv(x, w, b):
        y = jax.lax.conv_general_dilated(
            x, w, window_strides=(1, 1), padding="SAME",
            dimension_numbers=("NCHW", "OIHW", "NCHW"),
            precision=jax.lax.Precision.HIGHEST)
        return y + b[None, :, None, None]

    def inorm(x, g, bt):
        mu = x.mean(axis=(2, 3), keepdims=True)
        var = ((x - mu) ** 2).mean(axis=(2, 3), keepdims=True)
        return (x - mu) / jnp.sqrt(var + EPS) * g[None, :, None, None] + bt[None, :, None, None]

    out = jax.nn.relu(inorm(conv(x, p["w1"], p["b1"]), p["g1"], p["be1"]))
    out = inorm(conv(out, p["w2"], p["b2"]), p["g2"], p["be2"])
    return jax.nn.relu(out + x)


if __name__ == "__main__":
    N, C, H, W = 2, 4, 16, 16
    key = jax.random.PRNGKey(0)
    ks = jax.random.split(key, 9)
    params = {
        "w1": 0.1 * jax.random.normal(ks[0], (C, C, 3, 3), jnp.float32),  # OIHW
        "b1": 0.1 * jax.random.normal(ks[1], (C,), jnp.float32),
        "g1": 1.0 + 0.1 * jax.random.normal(ks[2], (C,), jnp.float32),
        "be1": 0.1 * jax.random.normal(ks[3], (C,), jnp.float32),
        "w2": 0.1 * jax.random.normal(ks[4], (C, C, 3, 3), jnp.float32),
        "b2": 0.1 * jax.random.normal(ks[5], (C,), jnp.float32),
        "g2": 1.0 + 0.1 * jax.random.normal(ks[6], (C,), jnp.float32),
        "be2": 0.1 * jax.random.normal(ks[7], (C,), jnp.float32),
    }
    x = jax.random.normal(ks[8], (N, C, H, W), jnp.float32)

    out = jax.block_until_ready(residual_block(x, params))
    ref = jax.block_until_ready(_reference(x, params))

    assert out.shape == (N, C, H, W)
    max_err = float(jnp.max(jnp.abs(out - ref)))
    assert jnp.allclose(out, ref, atol=2e-3, rtol=2e-3), f"max_err={max_err}"
    print("KERNEL_OK")
</pallas_src>

<mosaic_0001>
module attributes {stable_mosaic.version = 11 : i64} {
  func.func @kernel(%arg0: i32, %arg1: memref<1x4x256xf32, #tpu.memory_space<vmem>>, %arg2: memref<4x36xf32, #tpu.memory_space<vmem>>, %arg3: memref<4x36xf32, #tpu.memory_space<vmem>>, %arg4: memref<4x1xf32, #tpu.memory_space<vmem>>, %arg5: memref<4x1xf32, #tpu.memory_space<vmem>>, %arg6: memref<4x1xf32, #tpu.memory_space<vmem>>, %arg7: memref<4x1xf32, #tpu.memory_space<vmem>>, %arg8: memref<9x256xf32, #tpu.memory_space<vmem>>, %arg9: memref<1x4x256xf32, #tpu.memory_space<vmem>>, %arg10: memref<36x256xf32, #tpu.memory_space<vmem>>) attributes {dimension_semantics = [#tpu.dimension_semantics<parallel>], iteration_bounds = array<i64: 2>, scalar_prefetch = 0 : i64, scratch_operands = 1 : i64, tpu.core_type = #tpu.core_type<tc>, window_params = [{transform_indices = @transform_0, window_bounds = array<i64: 1, 4, 256>}, {pipeline_mode = #tpu.pipeline_mode<synchronous>, transform_indices = @transform_1, window_bounds = array<i64: 4, 36>}, {pipeline_mode = #tpu.pipeline_mode<synchronous>, transform_indices = @transform_2, window_bounds = array<i64: 4, 36>}, {pipeline_mode = #tpu.pipeline_mode<synchronous>, transform_indices = @transform_3, window_bounds = array<i64: 4, 1>}, {pipeline_mode = #tpu.pipeline_mode<synchronous>, transform_indices = @transform_4, window_bounds = array<i64: 4, 1>}, {pipeline_mode = #tpu.pipeline_mode<synchronous>, transform_indices = @transform_5, window_bounds = array<i64: 4, 1>}, {pipeline_mode = #tpu.pipeline_mode<synchronous>, transform_indices = @transform_6, window_bounds = array<i64: 4, 1>}, {pipeline_mode = #tpu.pipeline_mode<synchronous>, transform_indices = @transform_7, window_bounds = array<i64: 9, 256>}, {transform_indices = @transform_8, window_bounds = array<i64: 1, 4, 256>}]} {
    %c0 = arith.constant 0 : index
    %c0_0 = arith.constant 0 : index
    %c0_1 = arith.constant 0 : index
    %0 = vector.load %arg1[%c0, %c0_0, %c0_1] : memref<1x4x256xf32, #tpu.memory_space<vmem>>, vector<1x4x256xf32>
    %1 = vector.shape_cast %0 : vector<1x4x256xf32> to vector<4x256xf32>
    %c0_2 = arith.constant 0 : index
    %c0_3 = arith.constant 0 : index
    %2 = vector.load %arg8[%c0_2, %c0_3] : memref<9x256xf32, #tpu.memory_space<vmem>>, vector<9x256xf32>
    %c0_4 = arith.constant 0 : index
    %c0_5 = arith.constant 0 : index
    %3 = vector.load %arg2[%c0_4, %c0_5] : memref<4x36xf32, #tpu.memory_space<vmem>>, vector<4x36xf32>
    %c17_i32 = arith.constant 17 : i32
    %4 = tpu.dynamic_rotate %1 by %c17_i32 dim 1 : vector<4x256xf32>, i32 -> vector<4x256xf32>
    %5 = vector.extract_strided_slice %2 {offsets = [0, 0], sizes = [1, 256], strides = [1, 1]} : vector<9x256xf32> to vector<1x256xf32>
    %6 = vector.broadcast %5 : vector<1x256xf32> to vector<4x256xf32>
    %7 = arith.mulf %4, %6 : vector<4x256xf32>
    %c0_6 = arith.constant 0 : index
    %c0_7 = arith.constant 0 : index
    %8 = vector.load %arg10[%c0_6, %c0_7] : memref<36x256xf32, #tpu.memory_space<vmem>>, vector<4x256xf32>
    tpu.vector_store %arg10[%c0_6, %c0_7], %7 {strides = array<i32>} : memref<36x256xf32, #tpu.memory_space<vmem>>, vector<4x256xf32>,
    %c16_i32 = arith.constant 16 : i32
    %9 = tpu.dynamic_rotate %1 by %c16_i32 dim 1 : vector<4x256xf32>, i32 -> vector<4x256xf32>
    %10 = vector.extract_strided_slice %2 {offsets = [1, 0], sizes = [1, 256], strides = [1, 1]} : vector<9x256xf32> to vector<1x256xf32>
    %11 = vector.broadcast %10 : vector<1x256xf32> to vector<4x256xf32>
    %12 = arith.mulf %9, %11 : vector<4x256xf32>
    %c4 = arith.constant 4 : index
    %c0_8 = arith.constant 0 : index
    %13 = vector.load %arg10[%c4, %c0_8] : memref<36x256xf32, #tpu.memory_space<vmem>>, vector<4x256xf32>
    tpu.vector_store %arg10[%c4, %c0_8], %12 {strides = array<i32>} : memref<36x256xf32, #tpu.memory_space<vmem>>, vector<4x256xf32>,
    %c15_i32 = arith.constant 15 : i32
    %14 = tpu.dynamic_rotate %1 by %c15_i32 dim 1 : vector<4x256xf32>, i32 -> vector<4x256xf32>
    %15 = vector.extract_strided_slice %2 {offsets = [2, 0], sizes = [1, 256], strides = [1, 1]} : vector<9x256xf32> to vector<1x256xf32>
    %16 = vector.broadcast %15 : vector<1x256xf32> to vector<4x256xf32>
    %17 = arith.mulf %14, %16 : vector<4x256xf32>
    %c8 = arith.constant 8 : index
    %c0_9 = arith.constant 0 : index
    %18 = vector.load %arg10[%c8, %c0_9] : memref<36x256xf32, #tpu.memory_space<vmem>>, vector<4x256xf32>
    tpu.vector_store %arg10[%c8, %c0_9], %17 {strides = array<i32>} : memref<36x256xf32, #tpu.memory_space<vmem>>, vector<4x256xf32>,
    %c1_i32 = arith.constant 1 : i32
    %19 = tpu.dynamic_rotate %1 by %c1_i32 dim 1 : vector<4x256xf32>, i32 -> vector<4x256xf32>
    %20 = vector.extract_strided_slice %2 {offsets = [3, 0], sizes = [1, 256], strides = [1, 1]} : vector<9x256xf32> to vector<1x256xf32>
    %21 = vector.broadcast %20 : vector<1x256xf32> to vector<4x256xf32>
    %22 = arith.mulf %19, %21 : vector<4x256xf32>
    %c12 = arith.constant 12 : index
    %c0_10 = arith.constant 0 : index
    %23 = vector.load %arg10[%c12, %c0_10] : memref<36x256xf32, #tpu.memory_space<vmem>>, vector<4x256xf32>
    tpu.vector_store %arg10[%c12, %c0_10], %22 {strides = array<i32>} : memref<36x256xf32, #tpu.memory_space<vmem>>, vector<4x256xf32>,
    %c16 = arith.constant 16 : index
    %c0_11 = arith.constant 0 : index
    %24 = vector.load %arg10[%c16, %c0_11] : memref<36x256xf32, #tpu.memory_space<vmem>>, vector<4x256xf32>
    tpu.vector_store %arg10[%c16, %c0_11], %1 {strides = array<i32>} : memref<36x256xf32, #tpu.memory_space<vmem>>, vector<4x256xf32>,
    %c255_i32 = arith.constant 255 : i32
    %25 = tpu.dynamic_rotate %1 by %c255_i32 dim 1 : vector<4x256xf32>, i32 -> vector<4x256xf32>
    %26 = vector.extract_strided_slice %2 {offsets = [5, 0], sizes = [1, 256], strides = [1, 1]} : vector<9x256xf32> to vector<1x256xf32>
    %27 = vector.broadcast %26 : vector<1x256xf32> to vector<4x256xf32>
    %28 = arith.mulf %25, %27 : vector<4x256xf32>
    %c20 = arith.constant 20 : index
    %c0_12 = arith.constant 0 : index
    %29 = vector.load %arg10[%c20, %c0_12] : memref<36x256xf32, #tpu.memory_space<vmem>>, vector<4x256xf32>
    tpu.vector_store %arg10[%c20, %c0_12], %28 {strides = array<i32>} : memref<36x256xf32, #tpu.memory_space<vmem>>, vector<4x256xf32>,
    %c241_i32 = arith.constant 241 : i32
    %30 = tpu.dynamic_rotate %1 by %c241_i32 dim 1 : vector<4x256xf32>, i32 -> vector<4x256xf32>
    %31 = vector.extract_strided_slice %2 {offsets = [6, 0], sizes = [1, 256], strides = [1, 1]} : vector<9x256xf32> to vector<1x256xf32>
    %32 = vector.broadcast %31 : vector<1x256xf32> to vector<4x256xf32>
    %33 = arith.mulf %30, %32 : vector<4x256xf32>
    %c24 = arith.constant 24 : index
    %c0_13 = arith.constant 0 : index
    %34 = vector.load %arg10[%c24, %c0_13] : memref<36x256xf32, #tpu.memory_space<vmem>>, vector<4x256xf32>
    tpu.vector_store %arg10[%c24, %c0_13], %33 {strides = array<i32>} : memref<36x256xf32, #tpu.memory_space<vmem>>, vector<4x256xf32>,
    %c240_i32 = arith.constant 240 : i32
    %35 = tpu.dynamic_rotate %1 by %c240_i32 dim 1 : vector<4x256xf32>, i32 -> vector<4x256xf32>
    %36 = vector.extract_strided_slice %2 {offsets = [7, 0], sizes = [1, 256], strides = [1, 1]} : vector<9x256xf32> to vector<1x256xf32>
    %37 = vector.broadcast %36 : vector<1x256xf32> to vector<4x256xf32>
    %38 = arith.mulf %35, %37 : vector<4x256xf32>
    %c28 = arith.constant 28 : index
    %c0_14 = arith.constant 0 : index
    %39 = vector.load %arg10[%c28, %c0_14] : memref<36x256xf32, #tpu.memory_space<vmem>>, vector<4x256xf32>
    tpu.vector_store %arg10[%c28, %c0_14], %38 {strides = array<i32>} : memref<36x256xf32, #tpu.memory_space<vmem>>, vector<4x256xf32>,
    %c239_i32 = arith.constant 239 : i32
    %40 = tpu.dynamic_rotate %1 by %c239_i32 dim 1 : vector<4x256xf32>, i32 -> vector<4x256xf32>
    %41 = vector.extract_strided_slice %2 {offsets = [8, 0], sizes = [1, 256], strides = [1, 1]} : vector<9x256xf32> to vector<1x256xf32>
    %42 = vector.broadcast %41 : vector<1x256xf32> to vector<4x256xf32>
    %43 = arith.mulf %40, %42 : vector<4x256xf32>
    %c32 = arith.constant 32 : index
    %c0_15 = arith.constant 0 : index
    %44 = vector.load %arg10[%c32, %c0_15] : memref<36x256xf32, #tpu.memory_space<vmem>>, vector<4x256xf32>
    tpu.vector_store %arg10[%c32, %c0_15], %43 {strides = array<i32>} : memref<36x256xf32, #tpu.memory_space<vmem>>, vector<4x256xf32>,
    %c0_16 = arith.constant 0 : index
    %c0_17 = arith.constant 0 : index
    %45 = vector.load %arg10[%c0_16, %c0_17] : memref<36x256xf32, #tpu.memory_space<vmem>>, vector<36x256xf32>
    %cst = arith.constant dense<0.000000e+00> : vector<4x256xf32>
    %46 = tpu.matmul %3, %45, %cst {dimension_numbers = #tpu.dot_dimension_numbers<[1], [0], [0], [1], [0, 0, 1, 1], [], []>} : vector<4x36xf32>, vector<36x256xf32>, vector<4x256xf32> -> vector<4x256xf32>
    %c0_18 = arith.constant 0 : index
    %c0_19 = arith.constant 0 : index
    %47 = vector.load %arg4[%c0_18, %c0_19] : memref<4x1xf32, #tpu.memory_space<vmem>>, vector<4x1xf32>
    %c0_20 = arith.constant 0 : index
    %c0_21 = arith.constant 0 : index
    %48 = vector.load %arg5[%c0_20, %c0_21] : memref<4x1xf32, #tpu.memory_space<vmem>>, vector<4x1xf32>
    %cst_22 = arith.constant dense<0.000000e+00> : vector<4xf32>
    %49 = vector.multi_reduction <add>, %46, %cst_22 [1] : vector<4x256xf32> to vector<4xf32>
    %50 = vector.shape_cast %49 : vector<4xf32> to vector<4x1xf32>
    %51 = arith.mulf %46, %46 : vector<4x256xf32>
    %cst_23 = arith.constant dense<0.000000e+00> : vector<4xf32>
    %52 = vector.multi_reduction <add>, %51, %cst_23 [1] : vector<4x256xf32> to vector<4xf32>
    %53 = vector.shape_cast %52 : vector<4xf32> to vector<4x1xf32>
    %cst_24 = arith.constant 3.906250e-03 : f32
    %54 = vector.broadcast %cst_24 : f32 to vector<4x1xf32>
    %55 = arith.mulf %50, %54 : vector<4x1xf32>
    %cst_25 = arith.constant 3.906250e-03 : f32
    %56 = vector.broadcast %cst_25 : f32 to vector<4x1xf32>
    %57 = arith.mulf %53, %56 : vector<4x1xf32>
    %58 = arith.mulf %55, %55 : vector<4x1xf32>
    %59 = arith.subf %57, %58 : vector<4x1xf32>
    %cst_26 = arith.constant 9.99999974E-6 : f32
    %60 = vector.broadcast %cst_26 : f32 to vector<4x1xf32>
    %61 = arith.addf %59, %60 : vector<4x1xf32>
    %62 = math.rsqrt %61 : vector<4x1xf32>
    %63 = arith.mulf %62, %47 : vector<4x1xf32>
    %64 = arith.mulf %55, %63 : vector<4x1xf32>
    %65 = arith.subf %48, %64 : vector<4x1xf32>
    %66 = vector.broadcast %63 : vector<4x1xf32> to vector<4x256xf32>
    %67 = arith.mulf %46, %66 : vector<4x256xf32>
    %68 = vector.broadcast %65 : vector<4x1xf32> to vector<4x256xf32>
    %69 = arith.addf %67, %68 : vector<4x256xf32>
    %cst_27 = arith.constant 0.000000e+00 : f32
    %70 = vector.broadcast %cst_27 : f32 to vector<4x256xf32>
    %71 = arith.maximumf %69, %70 : vector<4x256xf32>
    %c0_28 = arith.constant 0 : index
    %c0_29 = arith.constant 0 : index
    %72 = vector.load %arg3[%c0_28, %c0_29] : memref<4x36xf32, #tpu.memory_space<vmem>>, vector<4x36xf32>
    %c17_i32_30 = arith.constant 17 : i32
    %73 = tpu.dynamic_rotate %71 by %c17_i32_30 dim 1 : vector<4x256xf32>, i32 -> vector<4x256xf32>
    %74 = vector.extract_strided_slice %2 {offsets = [0, 0], sizes = [1, 256], strides = [1, 1]} : vector<9x256xf32> to vector<1x256xf32>
    %75 = vector.broadcast %74 : vector<1x256xf32> to vector<4x256xf32>
    %76 = arith.mulf %73, %75 : vector<4x256xf32>
    %c0_31 = arith.constant 0 : index
    %c0_32 = arith.constant 0 : index
    %77 = vector.load %arg10[%c0_31, %c0_32] : memref<36x256xf32, #tpu.memory_space<vmem>>, vector<4x256xf32>
    tpu.vector_store %arg10[%c0_31, %c0_32], %76 {strides = array<i32>} : memref<36x256xf32, #tpu.memory_space<vmem>>, vector<4x256xf32>,
    %c16_i32_33 = arith.constant 16 : i32
    %78 = tpu.dynamic_rotate %71 by %c16_i32_33 dim 1 : vector<4x256xf32>, i32 -> vector<4x256xf32>
    %79 = vector.extract_strided_slice %2 {offsets = [1, 0], sizes = [1, 256], strides = [1, 1]} : vector<9x256xf32> to vector<1x256xf32>
    %80 = vector.broadcast %79 : vector<1x256xf32> to vector<4x256xf32>
    %81 = arith.mulf %78, %80 : vector<4x256xf32>
    %c4_34 = arith.constant 4 : index
    %c0_35 = arith.constant 0 : index
    %82 = vector.load %arg10[%c4_34, %c0_35] : memref<36x256xf32, #tpu.memory_space<vmem>>, vector<4x256xf32>
    tpu.vector_store %arg10[%c4_34, %c0_35], %81 {strides = array<i32>} : memref<36x256xf32, #tpu.memory_space<vmem>>, vector<4x256xf32>,
    %c15_i32_36 = arith.constant 15 : i32
    %83 = tpu.dynamic_rotate %71 by %c15_i32_36 dim 1 : vector<4x256xf32>, i32 -> vector<4x256xf32>
    %84 = vector.extract_strided_slice %2 {offsets = [2, 0], sizes = [1, 256], strides = [1, 1]} : vector<9x256xf32> to vector<1x256xf32>
    %85 = vector.broadcast %84 : vector<1x256xf32> to vector<4x256xf32>
    %86 = arith.mulf %83, %85 : vector<4x256xf32>
    %c8_37 = arith.constant 8 : index
    %c0_38 = arith.constant 0 : index
    %87 = vector.load %arg10[%c8_37, %c0_38] : memref<36x256xf32, #tpu.memory_space<vmem>>, vector<4x256xf32>
    tpu.vector_store %arg10[%c8_37, %c0_38], %86 {strides = array<i32>} : memref<36x256xf32, #tpu.memory_space<vmem>>, vector<4x256xf32>,
    %c1_i32_39 = arith.constant 1 : i32
    %88 = tpu.dynamic_rotate %71 by %c1_i32_39 dim 1 : vector<4x256xf32>, i32 -> vector<4x256xf32>
    %89 = vector.extract_strided_slice %2 {offsets = [3, 0], sizes = [1, 256], strides = [1, 1]} : vector<9x256xf32> to vector<1x256xf32>
    %90 = vector.broadcast %89 : vector<1x256xf32> to vector<4x256xf32>
    %91 = arith.mulf %88, %90 : vector<4x256xf32>
    %c12_40 = arith.constant 12 : index
    %c0_41 = arith.constant 0 : index
    %92 = vector.load %arg10[%c12_40, %c0_41] : memref<36x256xf32, #tpu.memory_space<vmem>>, vector<4x256xf32>
    tpu.vector_store %arg10[%c12_40, %c0_41], %91 {strides = array<i32>} : memref<36x256xf32, #tpu.memory_space<vmem>>, vector<4x256xf32>,
    %c16_42 = arith.constant 16 : index
    %c0_43 = arith.constant 0 : index
    %93 = vector.load %arg10[%c16_42, %c0_43] : memref<36x256xf32, #tpu.memory_space<vmem>>, vector<4x256xf32>
    tpu.vector_store %arg10[%c16_42, %c0_43], %71 {strides = array<i32>} : memref<36x256xf32, #tpu.memory_space<vmem>>, vector<4x256xf32>,
    %c255_i32_44 = arith.constant 255 : i32
    %94 = tpu.dynamic_rotate %71 by %c255_i32_44 dim 1 : vector<4x256xf32>, i32 -> vector<4x256xf32>
    %95 = vector.extract_strided_slice %2 {offsets = [5, 0], sizes = [1, 256], strides = [1, 1]} : vector<9x256xf32> to vector<1x256xf32>
    %96 = vector.broadcast %95 : vector<1x256xf32> to vector<4x256xf32>
    %97 = arith.mulf %94, %96 : vector<4x256xf32>
    %c20_45 = arith.constant 20 : index
    %c0_46 = arith.constant 0 : index
    %98 = vector.load %arg10[%c20_45, %c0_46] : memref<36x256xf32, #tpu.memory_space<vmem>>, vector<4x256xf32>
    tpu.vector_store %arg10[%c20_45, %c0_46], %97 {strides = array<i32>} : memref<36x256xf32, #tpu.memory_space<vmem>>, vector<4x256xf32>,
    %c241_i32_47 = arith.constant 241 : i32
    %99 = tpu.dynamic_rotate %71 by %c241_i32_47 dim 1 : vector<4x256xf32>, i32 -> vector<4x256xf32>
    %100 = vector.extract_strided_slice %2 {offsets = [6, 0], sizes = [1, 256], strides = [1, 1]} : vector<9x256xf32> to vector<1x256xf32>
    %101 = vector.broadcast %100 : vector<1x256xf32> to vector<4x256xf32>
    %102 = arith.mulf %99, %101 : vector<4x256xf32>
    %c24_48 = arith.constant 24 : index
    %c0_49 = arith.constant 0 : index
    %103 = vector.load %arg10[%c24_48, %c0_49] : memref<36x256xf32, #tpu.memory_space<vmem>>, vector<4x256xf32>
    tpu.vector_store %arg10[%c24_48, %c0_49], %102 {strides = array<i32>} : memref<36x256xf32, #tpu.memory_space<vmem>>, vector<4x256xf32>,
    %c240_i32_50 = arith.constant 240 : i32
    %104 = tpu.dynamic_rotate %71 by %c240_i32_50 dim 1 : vector<4x256xf32>, i32 -> vector<4x256xf32>
    %105 = vector.extract_strided_slice %2 {offsets = [7, 0], sizes = [1, 256], strides = [1, 1]} : vector<9x256xf32> to vector<1x256xf32>
    %106 = vector.broadcast %105 : vector<1x256xf32> to vector<4x256xf32>
    %107 = arith.mulf %104, %106 : vector<4x256xf32>
    %c28_51 = arith.constant 28 : index
    %c0_52 = arith.constant 0 : index
    %108 = vector.load %arg10[%c28_51, %c0_52] : memref<36x256xf32, #tpu.memory_space<vmem>>, vector<4x256xf32>
    tpu.vector_store %arg10[%c28_51, %c0_52], %107 {strides = array<i32>} : memref<36x256xf32, #tpu.memory_space<vmem>>, vector<4x256xf32>,
    %c239_i32_53 = arith.constant 239 : i32
    %109 = tpu.dynamic_rotate %71 by %c239_i32_53 dim 1 : vector<4x256xf32>, i32 -> vector<4x256xf32>
    %110 = vector.extract_strided_slice %2 {offsets = [8, 0], sizes = [1, 256], strides = [1, 1]} : vector<9x256xf32> to vector<1x256xf32>
    %111 = vector.broadcast %110 : vector<1x256xf32> to vector<4x256xf32>
    %112 = arith.mulf %109, %111 : vector<4x256xf32>
    %c32_54 = arith.constant 32 : index
    %c0_55 = arith.constant 0 : index
    %113 = vector.load %arg10[%c32_54, %c0_55] : memref<36x256xf32, #tpu.memory_space<vmem>>, vector<4x256xf32>
    tpu.vector_store %arg10[%c32_54, %c0_55], %112 {strides = array<i32>} : memref<36x256xf32, #tpu.memory_space<vmem>>, vector<4x256xf32>,
    %c0_56 = arith.constant 0 : index
    %c0_57 = arith.constant 0 : index
    %114 = vector.load %arg10[%c0_56, %c0_57] : memref<36x256xf32, #tpu.memory_space<vmem>>, vector<36x256xf32>
    %cst_58 = arith.constant dense<0.000000e+00> : vector<4x256xf32>
    %115 = tpu.matmul %72, %114, %cst_58 {dimension_numbers = #tpu.dot_dimension_numbers<[1], [0], [0], [1], [0, 0, 1, 1], [], []>} : vector<4x36xf32>, vector<36x256xf32>, vector<4x256xf32> -> vector<4x256xf32>
    %c0_59 = arith.constant 0 : index
    %c0_60 = arith.constant 0 : index
    %116 = vector.load %arg6[%c0_59, %c0_60] : memref<4x1xf32, #tpu.memory_space<vmem>>, vector<4x1xf32>
    %c0_61 = arith.constant 0 : index
    %c0_62 = arith.constant 0 : index
    %117 = vector.load %arg7[%c0_61, %c0_62] : memref<4x1xf32, #tpu.memory_space<vmem>>, vector<4x1xf32>
    %cst_63 = arith.constant dense<0.000000e+00> : vector<4xf32>
    %118 = vector.multi_reduction <add>, %115, %cst_63 [1] : vector<4x256xf32> to vector<4xf32>
    %119 = vector.shape_cast %118 : vector<4xf32> to vector<4x1xf32>
    %120 = arith.mulf %115, %115 : vector<4x256xf32>
    %cst_64 = arith.constant dense<0.000000e+00> : vector<4xf32>
    %121 = vector.multi_reduction <add>, %120, %cst_64 [1] : vector<4x256xf32> to vector<4xf32>
    %122 = vector.shape_cast %121 : vector<4xf32> to vector<4x1xf32>
    %cst_65 = arith.constant 3.906250e-03 : f32
    %123 = vector.broadcast %cst_65 : f32 to vector<4x1xf32>
    %124 = arith.mulf %119, %123 : vector<4x1xf32>
    %cst_66 = arith.constant 3.906250e-03 : f32
    %125 = vector.broadcast %cst_66 : f32 to vector<4x1xf32>
    %126 = arith.mulf %122, %125 : vector<4x1xf32>
    %127 = arith.mulf %124, %124 : vector<4x1xf32>
    %128 = arith.subf %126, %127 : vector<4x1xf32>
    %cst_67 = arith.constant 9.99999974E-6 : f32
    %129 = vector.broadcast %cst_67 : f32 to vector<4x1xf32>
    %130 = arith.addf %128, %129 : vector<4x1xf32>
    %131 = math.rsqrt %130 : vector<4x1xf32>
    %132 = arith.mulf %131, %116 : vector<4x1xf32>
    %133 = arith.mulf %124, %132 : vector<4x1xf32>
    %134 = arith.subf %117, %133 : vector<4x1xf32>
    %135 = vector.broadcast %132 : vector<4x1xf32> to vector<4x256xf32>
    %136 = arith.mulf %115, %135 : vector<4x256xf32>
    %137 = vector.broadcast %134 : vector<4x1xf32> to vector<4x256xf32>
    %138 = arith.addf %136, %137 : vector<4x256xf32>
    %139 = arith.addf %138, %1 : vector<4x256xf32>
    %cst_68 = arith.constant 0.000000e+00 : f32
    %140 = vector.broadcast %cst_68 : f32 to vector<4x256xf32>
    %141 = arith.maximumf %139, %140 : vector<4x256xf32>
    %c0_69 = arith.constant 0 : index
    %c0_70 = arith.constant 0 : index
    %c0_71 = arith.constant 0 : index
    %142 = vector.load %arg9[%c0_69, %c0_70, %c0_71] : memref<1x4x256xf32, #tpu.memory_space<vmem>>, vector<1x4x256xf32>
    %143 = vector.shape_cast %142 : vector<1x4x256xf32> to vector<4x256xf32>
    %144 = vector.shape_cast %141 : vector<4x256xf32> to vector<1x4x256xf32>
    tpu.vector_store %arg9[%c0_69, %c0_70, %c0_71], %144 {strides = array<i32>} : memref<1x4x256xf32, #tpu.memory_space<vmem>>, vector<1x4x256xf32>,
    return
  }
  func.func @transform_0(%arg0: i32) -> (i32, i32, i32) {
    %c0_i32 = arith.constant 0 : i32
    %c0_i32_0 = arith.constant 0 : i32
    %c0_i32_1 = arith.constant 0 : i32
    return %arg0, %c0_i32, %c0_i32_0 : i32, i32, i32
  }
  func.func @transform_1(%arg0: i32) -> (i32, i32) {
    %c0_i32 = arith.constant 0 : i32
    %c0_i32_0 = arith.constant 0 : i32
    %c0_i32_1 = arith.constant 0 : i32
    return %c0_i32, %c0_i32_0 : i32, i32
  }
  func.func @transform_2(%arg0: i32) -> (i32, i32) {
    %c0_i32 = arith.constant 0 : i32
    %c0_i32_0 = arith.constant 0 : i32
    %c0_i32_1 = arith.constant 0 : i32
    return %c0_i32, %c0_i32_0 : i32, i32
  }
  func.func @transform_3(%arg0: i32) -> (i32, i32) {
    %c0_i32 = arith.constant 0 : i32
    %c0_i32_0 = arith.constant 0 : i32
    %c0_i32_1 = arith.constant 0 : i32
    return %c0_i32, %c0_i32_0 : i32, i32
  }
  func.func @transform_4(%arg0: i32) -> (i32, i32) {
    %c0_i32 = arith.constant 0 : i32
    %c0_i32_0 = arith.constant 0 : i32
    %c0_i32_1 = arith.constant 0 : i32
    return %c0_i32, %c0_i32_0 : i32, i32
  }
  func.func @transform_5(%arg0: i32) -> (i32, i32) {
    %c0_i32 = arith.constant 0 : i32
    %c0_i32_0 = arith.constant 0 : i32
    %c0_i32_1 = arith.constant 0 : i32
    return %c0_i32, %c0_i32_0 : i32, i32
  }
  func.func @transform_6(%arg0: i32) -> (i32, i32) {
    %c0_i32 = arith.constant 0 : i32
    %c0_i32_0 = arith.constant 0 : i32
    %c0_i32_1 = arith.constant 0 : i32
    return %c0_i32, %c0_i32_0 : i32, i32
  }
  func.func @transform_7(%arg0: i32) -> (i32, i32) {
    %c0_i32 = arith.constant 0 : i32
    %c0_i32_0 = arith.constant 0 : i32
    %c0_i32_1 = arith.constant 0 : i32
    return %c0_i32, %c0_i32_0 : i32, i32
  }
  func.func @transform_8(%arg0: i32) -> (i32, i32, i32) {
    %c0_i32 = arith.constant 0 : i32
    %c0_i32_0 = arith.constant 0 : i32
    %c0_i32_1 = arith.constant 0 : i32
    return %arg0, %c0_i32, %c0_i32_0 : i32, i32, i32
  }
}

</mosaic_0001>

<bundles_post_ra>
// kernel: tpu_custom_call.1
= control target key start
LH: loop header
LB: loop body
LE: loop exit
PB: predicated region body
PF: predicated region fallthrough
CT: control target
= control target key end

     0   :  { %13 = vsyncpa [#allocation4], 0  ;;  %s1660_s0 = inlined_call_operand.hbm [shape: f32[2,4,256], index: 0, kind: input, shape index: {}]   ;;  %s1661_s1 = inlined_call_operand.vmem [shape: f32[4,36], index: 1, kind: input, shape index: {}]   ;;  %s1662_s2 = inlined_call_operand.vmem [shape: f32[4,36], index: 2, kind: input, shape index: {}]   ;;  %s1663_s3 = inlined_call_operand.vmem [shape: f32[4,1], index: 3, kind: input, shape index: {}]   ;;  %s1664_s4 = inlined_call_operand.vmem [shape: f32[4,1], index: 4, kind: input, shape index: {}]   ;;  %s1665_s5 = inlined_call_operand.vmem [shape: f32[4,1], index: 5, kind: input, shape index: {}]   ;;  %s1666_s6 = inlined_call_operand.vmem [shape: f32[4,1], index: 6, kind: input, shape index: {}]   ;;  %s1667_s7 = inlined_call_operand.vmem [shape: f32[9,256], index: 7, kind: input, shape index: {}]   ;;  %s1668_s8 = inlined_call_operand.hbm [shape: f32[2,4,256], index: 8, kind: output, shape index: {}]  }
   0x1   :  { %15 = vsyncpa [#allocation4 + $0x1], 0 }
   0x2   :  { %16 = vsyncpa [#allocation5], 0 }
   0x3   :  { %18 = vsyncpa [#allocation5 + $0x1], 0  ;;  %s1228_s27 = smov 0   ;;  %s1230_s28 = smov 0  }
   0x4   :  { %s1232_s29 = smov 0   ;;  %s1234_s30 = smov 0  }
   0x5 LB: > { %s1249_s9 = sadd.s32 4294967295, %s1169_s30   ;;  %s970_s10 = sadd.s32 4294967294, %s1169_s30   ;;  %s1169_s30 = sphi %s1234_s30, %s1685_s30   ;;  %s1165_s29 = sphi %s1232_s29, %s1684_s29   ;;  %s1161_s28 = sphi %s1230_s28, %s1683_s28   ;;  %s1157_s27 = sphi %s1228_s27, %s1682_s27  }
   0x6   : > { %s1253_s11 = sadd.s32 1, %s1169_s30   ;;  %s31_s12 = sadd.s32 1, %s1165_s29 }
   0x7   : > { %s28_s13 = ssub.s32 %s1169_s30, %s1253_s11  ;;  %p38_p0 = scmp.ne.s32.totalorder %s1165_s29, %s1161_s28 }
   0x8   : > { %p29_p1 = scmp.eq.s32.totalorder %s28_s13, 0  ;;  %p39_p2 = scmp.eq.s32.totalorder %s1169_s30, 0 }
   0x9   : > { %p44_p3 = scmp.ne.s32.totalorder %s1161_s28, %s1157_s27  ;;  %p45_p4 = scmp.eq.s32.totalorder %s1249_s9, 0 }
   0xa   : > { %s1265_s14 = scalar_select %p29_p1, %s1165_s29, %s31_s12  }
   0xb   : > { %p1267_p5 = por %p39_p2, %p38_p0  ;;  %p1271_p6 = por %p45_p4, %p44_p3 }
   0xc   : > { %p215_p7 = scmp.eq.s32.totalorder %s1249_s9, 1  ;;  %p221_p8 = scmp.eq.s32.totalorder %s970_s10, 1 }
   0xd   : > { %p1022_p10 = scmp.lt.s32.totalorder %s1169_s30, 2  ;;  %s262_s19 = sand.u32 1, %s1165_s29  }
   0xe   : > { %p1278_p11 = por %p215_p7, %p38_p0  ;;  %p1282_p12 = por %p221_p8, %p44_p3 }
   0xf   : > { %s992_s20 = sshll.u32 %s1169_s30, 7  ;;  %s973_s21 = sshll.u32 %s262_s19, 3 }
  0x10   : > { %s1673_s17 = scalar_select %p1278_p11, 1, 0 }
  0x11   : > { %s1674_s18 = scalar_select %p1282_p12, 1, 0 }
  0x12   : > { %s1291_s24 = scalar_lea.hbm %s1660_s0, %s992_s20  ;;  %s266_s25 = scalar_lea.vmem [#allocation3], %s973_s21 }
  0x13   : > { %s274_s26 = sshll.u32 %s266_s25, 4  ;;  %p1295_p13 = pnand %p1022_p10, %p1267_p5  ;;  %s1299_s26 = int_to_ptr.vmem [resolvable:$true] %s274_s26 }
  0x14   : > { %s263_s12 = scalar_lea.sflag [#allocation4], %s262_s19  ;;  %s1073_s13 = scalar_lea.hbm %s1291_s24, 128 }
  0x15   : > { %p1074_p2 = scmp.ne.s32.totalorder %s1291_s24, %s1073_s13  ;;  %p1075_p3 = pneg %p1295_p13 }
  0x16   : > { %s1078_s21 = scalar_lea.hbm %s1660_s0, 256  ;;  %p1079_p5 = scmp.lt.u32.totalorder %s1291_s24, %s1660_s0 }
  0x17   : > { %p1076_p4 = pnand %p1075_p3, %p1074_p2  ;;  %p1080_p8 = scmp.lt.u32.totalorder %s1078_s21, %s1073_s13 }
  0x18   : > { %p1082_p9 = scmp.lt.u32.totalorder %s1073_s13, %s1291_s24 }
  0x19   : > { %p1077_p7 = pneg %p1076_p4  ;;  %p1081_p10 = por %p1080_p8, %p1079_p5 }
  0x1b   : > { %p1083_p0 = por %p1082_p9, %p1081_p10 }
  0x1d   : > { %p1084_p1 = pnand %p1083_p0, %p1077_p7 }
  0x1f   : > { %1087 = shalt.err (!%p1084_p1)
}
  0x20   : > { %s1088_s19 = scalar_lea.vmem %s1299_s26, 128  ;;  %s1171_s25 = smov [#allocation3]  }
  0x21   : > { %p1089_p2 = scmp.ne.s32.totalorder %s1299_s26, %s1088_s19  ;;  %s1093_s15 = sshll.u32 %s1171_s25, 4  ;;  %s1094_s15 = int_to_ptr.vmem [resolvable:$false] %s1093_s15 }
  0x22   : > { %s1095_s20 = scalar_lea.vmem %s1094_s15, 256  ;;  %p1096_p11 = scmp.lt.s32.totalorder %s1299_s26, %s1094_s15 }
  0x23   : > { %p1091_p4 = pnand %p1089_p2, %p1075_p3  ;;  %p1097_p5 = scmp.lt.s32.totalorder %s1095_s20, %s1088_s19 }
  0x25   : > { %p1092_p12 = pneg %p1091_p4  ;;  %p1098_p8 = por %p1097_p5, %p1096_p11 }
  0x27   : > { %p1099_p9 = pnand %p1098_p8, %p1092_p12 }
  0x29   : > { %1102 = shalt.err (!%p1099_p9)
}
  0x2a   : > { %1017 = dma.hbm_to_vmem [thread:$0]  (!%p1295_p13), %s1291_s24, 128, %s1299_s26, %s263_s12  }
  0x2b   : > { %p1676_p0 = scmp.lt.s32.totalorder %s1169_s30, 3  ;;  %p1677_p1 = scmp.ge.s32.totalorder %s1169_s30, 1 }
  0x2d   : > { %p280_p3 = pnand %p1677_p1, %p1676_p0 }
  0x2e   : > { %s1333_s13 = sand.u32 (!%p280_p3), 1, %s1161_s28  }
  0x2f   : > { %283 = sbr.rel (%p280_p3) target bundleno = 1432 (0x598), region = 52  ;;  %s1670_s21 = sshll.u32 (!%p280_p3), %s1333_s13, 3 }
  0x30   : > { %s286_s22 = scalar_lea.sflag (!%p280_p3), [#allocation4], %s1333_s13  ;;  %s289_s10 = scalar_lea.vmem (!%p280_p3), [#allocation3], %s1670_s21 }
  0x36   : > { %1148 = dma.done.wait (%p1271_p6), %s286_s22, 128  }
  0x37   : > { %1150 = vsyncadd (%p1271_p6), %s286_s22, 4294967168  ;;  %v1343_v0 = vld [vmem:[%s289_s10] sm:$0xff]  ;;  %s1172_s24 = smov 1   ;;  %s1173_s26 = smov 16   ;;  %v1180_v2 = vmov 0.0   ;;  %v335_v3 = vlaneseq  ;;  %v1391_v7 = vld [vmem:[%s1667_s7] sm:$0xff] }
  0x38   : > { %396 = vrot.lane.b32.xlu1 %v1343_v0, %s1172_s24  ;;  %421 = vst [vmem:[#allocation2 + $0x20] sm:$0xf] %v1343_v0  ;;  %352 = vrot.lane.b32.xlu0 %v1343_v0, %s1173_s26  ;;  %v1352_v1 = vcombine.high %v1343_v0, %v1343_v0  ;;  %s1174_s16 = smov 17   ;;  %s1175_s12 = smov 15   ;;  %v1396_v8 = vld [vmem:[%s1667_s7 + $0x8] sm:$0xff]  ;;  %vm525_vm8 = vcmask 1043456  }
  0x39   : > { %s1176_s23 = smov 127   ;;  %s1177_s19 = smov 112   ;;  %596 = vmatprep.mubr.f32.mxu0 %v1180_v2  ;;  %832 = vmatprep.mubr.f32.mxu1 %v1180_v2  ;;  %v1383_v4 = vshrl.u32 %v335_v3, 7  ;;  %v1385_v5 = vand.u32 127, %v335_v3  ;;  %vm521_vm9 = vcmask 293888  }
  0x3a   : > { %422 = vst [vmem:[#allocation2 + $0x28] sm:$0xf] %v1352_v1  ;;  %s1178_s25 = smov 113   ;;  %s1179_s15 = smov 111  }
  0x3b   : > { %v405_v6 = vsub.s32 3, %v1383_v4  ;;  %v342_v11 = vsub.s32 0, %v1383_v4  ;;  %vm400_vm0 = vcmp.lt.s32.totalorder %v1385_v5, 1  ;;  %v361_v14 = vsub.s32 1, %v1383_v4  ;;  %p1679_p11 = scmp.ne.s32.totalorder %s1673_s17, 0 }
  0x3c   : > { %331 = vrot.lane.b32.xlu0 %v1343_v0, %s1174_s16  ;;  %398 = vrot.lane.b32.xlu1 %v1352_v1, %s1172_s24  ;;  %vm337_vm1 = vcmp.lt.s32.totalorder %v1385_v5, 17  ;;  %vm356_vm2 = vcmp.lt.s32.totalorder %v1385_v5, 16  ;;  %v386_v17 = vsub.s32 2, %v1383_v4  ;;  %vm381_vm3 = vcmp.lt.s32.totalorder %v1385_v5, 15 }
  0x3d   : > { %v1401_v12 = vrot.slane %v1391_v7, %v405_v6  ;;  %v1404_v13 = vrot.slane %v1396_v8, %v405_v6  ;;  %v1415_v20 = vrot.slane %v1391_v7, %v342_v11  ;;  %v1418_v21 = vrot.slane %v1396_v8, %v342_v11 }
  0x3e   : > { %v1423_v24 = vrot.slane %v1391_v7, %v361_v14  ;;  %v1426_v25 = vrot.slane %v1396_v8, %v361_v14  ;;  %v432_v26 = vsub.s32 5, %v1383_v4  ;;  %v1431_v31 = vrot.slane %v1391_v7, %v386_v17 }
  0x3f   : > { %v1434_v32 = vrot.slane %v1396_v8, %v386_v17  ;;  %vm427_vm4 = vcmp.lt.s32.totalorder %v1385_v5, 127  ;;  %v476_v47 = vsub.s32 7, %v1383_v4  ;;  %vm471_vm5 = vcmp.lt.s32.totalorder %v1385_v5, 112 }
  0x40   : > { %333 = vrot.lane.b32.xlu1 %v1352_v1, %s1174_s16  ;;  %354 = vrot.lane.b32.xlu0 %v1352_v1, %s1173_s26  ;;  %v1457_v50 = vrot.slane %v1391_v7, %v432_v26  ;;  %v1460_v51 = vrot.slane %v1396_v8, %v432_v26  ;;  %v457_v60 = vsub.s32 6, %v1383_v4  ;;  %vm452_vm6 = vcmp.lt.s32.totalorder %v1385_v5, 113 }
  0x41   : > { %v1468_v56 = vrot.slane %v1391_v7, %v476_v47  ;;  %v1473_v59 = vrot.slane %v1396_v8, %v476_v47  ;;  %vm496_vm7 = vcmp.lt.s32.totalorder %v1385_v5, 111  ;;  %v642_v5 = vld [vmem:[%s1662_s2] sm:$0xf] }
  0x42   : > { %v1484_v4 = vrot.slane %v1391_v7, %v457_v60  ;;  %v1487_v11 = vrot.slane %v1396_v8, %v457_v60 }
  0x44   : > { %379 = vrot.lane.b32.xlu1 %v1352_v1, %s1175_s12  ;;  %377 = vrot.lane.b32.xlu0 %v1343_v0, %s1175_s12 }
  0x48   : > { %425 = vrot.lane.b32.xlu1 %v1352_v1, %s1176_s23  ;;  %423 = vrot.lane.b32.xlu0 %v1343_v0, %s1176_s23 }
  0x4c   : > { %469 = vrot.lane.b32.xlu1 %v1352_v1, %s1177_s19  ;;  %467 = vrot.lane.b32.xlu0 %v1343_v0, %s1177_s19 }
  0x50   : > { %450 = vrot.lane.b32.xlu1 %v1352_v1, %s1178_s25  ;;  %448 = vrot.lane.b32.xlu0 %v1343_v0, %s1178_s25 }
  0x54   : > { %494 = vrot.lane.b32.xlu1 %v1352_v1, %s1179_s15  ;;  %492 = vrot.lane.b32.xlu0 %v1343_v0, %s1179_s15 }
  0xaa   : > { %v397_v9 = vpop.permute.xlu1 %396  ;;  %v353_v10 = vpop.permute.xlu0 %352 }
  0xae   : > { %v332_v15 = vpop.permute.xlu0 %331  ;;  %v399_v16 = vpop.permute.xlu1 %398 }
  0xaf   : > { %v401_v18 = vsel %vm400_vm0, %v397_v9, %v399_v16  ;;  %v402_v19 = vsel %vm400_vm0, %v399_v16, %v397_v9 }
  0xb0   : > { %v411_v22 = vmul.f32 %v1401_v12, %v402_v19  ;;  %v412_v23 = vmul.f32 %v1404_v13, %v401_v18 }
  0xb2   : > { %v415_v27 = vrot.slane %v411_v22, 4  ;;  %v416_v28 = vrot.slane %v412_v23, 4  ;;  %v334_v29 = vpop.permute.xlu1 %333  ;;  %v355_v30 = vpop.permute.xlu0 %354 }
  0xb3   : > { %v338_v33 = vsel %vm337_vm1, %v332_v15, %v334_v29  ;;  %v339_v34 = vsel %vm337_vm1, %v334_v29, %v332_v15  ;;  %v357_v35 = vsel %vm356_vm2, %v353_v10, %v355_v30  ;;  %v358_v36 = vsel %vm356_vm2, %v355_v30, %v353_v10  ;;  %v1499_v30 = vld [vmem:[%s1667_s7 + $0x10] ss:$0 sm:$0xff] }
  0xb4   : > { %419 = vst [vmem:[#allocation2 + $0x10] sm:$0xf0] %v415_v27  ;;  %420 = vst [vmem:[#allocation2 + $0x18] sm:$0xf0] %v416_v28  ;;  %v348_v37 = vmul.f32 %v1415_v20, %v339_v34  ;;  %v349_v38 = vmul.f32 %v1418_v21, %v338_v33  ;;  %v367_v39 = vmul.f32 %v1423_v24, %v358_v36  ;;  %v1504_v33 = vld [vmem:[%s1667_s7 + $0x18] ss:$0 sm:$0xff] }
  0xb5   : > { %v368_v40 = vmul.f32 %v1426_v25, %v357_v35 }
  0xb6   : > { %350 = vst [vmem:[#allocation2] sm:$0xf] %v348_v37  ;;  %351 = vst [vmem:[#allocation2 + $0x8] sm:$0xf] %v349_v38  ;;  %v371_v41 = vrot.slane %v367_v39, 4  ;;  %v380_v43 = vpop.permute.xlu1 %379  ;;  %v378_v44 = vpop.permute.xlu0 %377 }
  0xb7   : > { %v372_v42 = vrot.slane %v368_v40, 4  ;;  %v382_v45 = vsel %vm381_vm3, %v378_v44, %v380_v43  ;;  %v383_v46 = vsel %vm381_vm3, %v380_v43, %v378_v44 }
  0xb8   : > { %375 = vst [vmem:[#allocation2] sm:$0xf0] %v371_v41  ;;  %v392_v48 = vmul.f32 %v1431_v31, %v383_v46  ;;  %v393_v49 = vmul.f32 %v1434_v32, %v382_v45 }
  0xb9   : > { %376 = vst [vmem:[#allocation2 + $0x8] sm:$0xf0] %v372_v42 }
  0xba   : > { %394 = vst [vmem:[#allocation2 + $0x10] sm:$0xf] %v392_v48  ;;  %395 = vst [vmem:[#allocation2 + $0x18] sm:$0xf] %v393_v49  ;;  %v426_v52 = vpop.permute.xlu1 %425  ;;  %v424_v53 = vpop.permute.xlu0 %423  ;;  %v327_v48 = vld [vmem:[%s1661_s1] sm:$0xf] }
  0xbb   : > { %v428_v54 = vsel %vm427_vm4, %v424_v53, %v426_v52  ;;  %v429_v55 = vsel %vm427_vm4, %v426_v52, %v424_v53 }
  0xbc   : > { %v438_v57 = vmul.f32 %v1457_v50, %v428_v54  ;;  %v439_v58 = vmul.f32 %v1460_v51, %v429_v55 }
  0xbe   : > { %v442_v61 = vrot.slane %v438_v57, 4  ;;  %v443_v62 = vrot.slane %v439_v58, 4  ;;  %v470_v63 = vpop.permute.xlu1 %469  ;;  %v468_v2 = vpop.permute.xlu0 %467 }
  0xbf   : > { %v472_v3 = vsel %vm471_vm5, %v468_v2, %v470_v63  ;;  %v473_v6 = vsel %vm471_vm5, %v470_v63, %v468_v2  ;;  %v511_v16 = vld [vmem:[#allocation2] sm:$0xff]  ;;  %v1181_v63 = vmov 0  }
  0xc0   : > { %446 = vst [vmem:[#allocation2 + $0x20] sm:$0xf0] %v442_v61  ;;  %447 = vst [vmem:[#allocation2 + $0x28] sm:$0xf0] %v443_v62  ;;  %v482_v9 = vmul.f32 %v1468_v56, %v472_v3  ;;  %v483_v10 = vmul.f32 %v1473_v59, %v473_v6  ;;  %v512_v14 = vld [vmem:[#allocation2 + $0x8] sm:$0xff]  ;;  %1066 = vset.pattern.permute.xlu0 %v1181_v63  ;;  %1067 = vset.pattern.permute.xlu1 %v1181_v63 }
  0xc1   : > { %v514_v15 = vld [vmem:[#allocation2 + $0x18] sm:$0xff]  ;;  %v513_v17 = vld [vmem:[#allocation2 + $0x10] sm:$0xff] }
  0xc2   : > { %v486_v18 = vrot.slane %v482_v9, 4  ;;  %v487_v19 = vrot.slane %v483_v10, 4  ;;  %v451_v22 = vpop.permute.xlu1 %450  ;;  %v449_v23 = vpop.permute.xlu0 %448  ;;  %v994_v26 = vpack.c.bf16 %v514_v15, %v512_v14  ;;  %v996_v27 = vpack.c.bf16 %v513_v17, %v511_v16  ;;  %v603_v16 = vld [vmem:[%s1663_s3] sm:$0xf] }
  0xc3   : > { %v453_v28 = vsel %vm452_vm6, %v449_v23, %v451_v22  ;;  %v454_v7 = vsel %vm452_vm6, %v451_v22, %v449_v23 }
  0xc4   : > { %490 = vst [vmem:[#allocation2 + $0x30] sm:$0xf0] %v486_v18  ;;  %491 = vst [vmem:[#allocation2 + $0x38] sm:$0xf0] %v487_v19  ;;  %v463_v8 = vmul.f32 %v1484_v4, %v453_v28  ;;  %v464_v29 = vmul.f32 %v1487_v11, %v454_v7  ;;  %995 = vmatprep.subr.bf16.mxu0 %v994_v26  ;;  %v604_v19 = vld [vmem:[%s1664_s4] sm:$0xf] }
  0xc5   : > { %997 = vmatpush1.bf16.msra.mxu0 %v996_v27 }
  0xc6   : > { %465 = vst [vmem:[#allocation2 + $0x30] sm:$0xf] %v463_v8  ;;  %466 = vst [vmem:[#allocation2 + $0x38] sm:$0xf] %v464_v29  ;;  %v495_v34 = vpop.permute.xlu1 %494  ;;  %v493_v35 = vpop.permute.xlu0 %492 }
  0xc7   : > { %v497_v36 = vsel %vm496_vm7, %v493_v35, %v495_v34  ;;  %v498_v37 = vsel %vm496_vm7, %v495_v34, %v493_v35  ;;  %v516_v40 = vld [vmem:[#allocation2 + $0x28] sm:$0xff]  ;;  %v515_v42 = vld [vmem:[#allocation2 + $0x20] sm:$0xff] }
  0xc8   : > { %v507_v38 = vmul.f32 %v1499_v30, %v497_v36  ;;  %v508_v39 = vmul.f32 %v1504_v33, %v498_v37 }
  0xca   : > { %509 = vst [vmem:[#allocation2 + $0x40] sm:$0xf] %v507_v38  ;;  %510 = vst [vmem:[#allocation2 + $0x48] sm:$0xf] %v508_v39 }
  0xcd   : > { %v518_v41 = vld [vmem:[#allocation2 + $0x38] sm:$0xff]  ;;  %v517_v43 = vld [vmem:[#allocation2 + $0x30] sm:$0xff] }
  0xce   : > { %v998_v44 = vpack.c.bf16 %v518_v41, %v516_v40  ;;  %v1000_v45 = vpack.c.bf16 %v517_v43, %v515_v42 }
  0xd0   : > { %999 = vmatprep.subr.bf16.mxu0 %v998_v44 }
  0xd1   : > { %1001 = vmatpush1.bf16.msra.mxu0 %v1000_v45  ;;  %v520_v46 = vld [vmem:[#allocation2 + $0x48] sm:$0xf]  ;;  %v519_v47 = vld [vmem:[#allocation2 + $0x40] sm:$0xf] }
  0xd2   : > { %981 = vmatprep.subr.msk.mxu0 %vm525_vm8, %v520_v46 }
  0xd5   : > { %982 = vmatpush1.msk.msra.mxu0 %vm525_vm8, %v519_v47 }
  0xd6   : > { %983 = vmatmul.mubr.msk.f32.vlgmr.msra.gmra.mrb[0].mxu0 %vm521_vm9, %v327_v48 }
 0x1a9   : > { %v598_v49 = vpop.f32.mrb[0].mxu0 }
 0x1aa   : > { %v610_v52 = vmul.f32 %v598_v49, %v598_v49  ;;  %v600_v53 = vpop.f32.mrb[1].mxu0  ;;  %v605_v54 = vsel %vm525_vm8, %v598_v49, 0.0 }
 0x1ab   : > { %v606_v55 = vsel %vm525_vm8, %v600_v53, 0.0  ;;  %v611_v57 = vmul.f32 %v600_v53, %v600_v53 }
 0x1ac   : > { %v607_v58 = vadd.f32 %v606_v55, %v605_v54  ;;  %v612_v60 = vsel %vm525_vm8, %v610_v52, 0.0 }
 0x1ad   : > { %v613_v61 = vsel %vm525_vm8, %v611_v57, 0.0 }
 0x1ae   : > { %608 = vadd.xlane.f32.xlu0 %v607_v58  ;;  %v614_v62 = vadd.f32 %v613_v61, %v612_v60 }
 0x1b0   : > { %615 = vadd.xlane.f32.xlu1 %v614_v62 }
 0x23b   : > { %v609_v2 = vpop.xlane.xlu0 %608 }
 0x23c   : > { %v617_v3 = vmul.f32 0.00390625, %v609_v2 }
 0x23d   : > { %v616_v6 = vpop.xlane.xlu1 %615 }
 0x23e   : > { %v619_v9 = vmul.f32 %v617_v3, %v617_v3  ;;  %v618_v10 = vmul.f32 0.00390625, %v616_v6 }
 0x240   : > { %v620_v14 = vsub.f32 %v618_v10, %v619_v9 }
 0x242   : > { %v621_v15 = vadd.f32 1e-05, %v620_v14 }
 0x244   : > { %1069 = vrsqrt.f32 %v621_v15 }
 0x24e   : > { %v1070_v17 = vpop.eup %1069 }
 0x24f   : > { %v623_v18 = vmul.f32 %v1070_v17, %v603_v16 }
 0x251   : > { %628 = vperm.xlu0 %1066, %v623_v18   ;;  %v624_v22 = vmul.f32 %v623_v18, %v617_v3 }
 0x253   : > { %v625_v23 = vsub.f32 %v604_v19, %v624_v22 }
 0x255   : > { %635 = vperm.xlu1 %1067, %v625_v23  }
 0x2d0   : > { %v629_v26 = vpop.permute.xlu0 %628 }
 0x2d1   : > { %v631_v27 = vmul.f32 %v629_v26, %v598_v49  ;;  %v632_v28 = vmul.f32 %v629_v26, %v600_v53 }
 0x2d4   : > { %v636_v7 = vpop.permute.xlu1 %635 }
 0x2d5   : > { %v638_v8 = vadd.f32 %v636_v7, %v631_v27  ;;  %v639_v29 = vadd.f32 %v636_v7, %v632_v28 }
 0x2d7   : > { %v640_v34 = vmax.f32 %v638_v8, 0.0  ;;  %v641_v35 = vmax.f32 %v639_v29, 0.0 }
 0x2d9   : > { %695 = vst [vmem:[#allocation2 + $0x20] sm:$0xf] %v640_v34  ;;  %696 = vst [vmem:[#allocation2 + $0x28] sm:$0xf] %v641_v35  ;;  %669 = vrot.lane.b32.xlu0 %v640_v34, %s1175_s12  ;;  %653 = vrot.lane.b32.xlu1 %v640_v34, %s1173_s26 }
 0x2dd   : > { %697 = vrot.lane.b32.xlu0 %v640_v34, %s1176_s23  ;;  %655 = vrot.lane.b32.xlu1 %v641_v35, %s1173_s26  ;;  %s886_s26 = scalar_lea.sflag [#allocation5], %s1333_s13 }
 0x2e1   : > { %723 = vrot.lane.b32.xlu0 %v640_v34, %s1177_s19  ;;  %679 = vrot.lane.b32.xlu1 %v640_v34, %s1172_s24 }
 0x2e5   : > { %713 = vrot.lane.b32.xlu0 %v640_v34, %s1178_s25  ;;  %681 = vrot.lane.b32.xlu1 %v641_v35, %s1172_s24 }
 0x2e9   : > { %739 = vrot.lane.b32.xlu0 %v640_v34, %s1179_s15  ;;  %643 = vrot.lane.b32.xlu1 %v640_v34, %s1174_s16 }
 0x2ed   : > { %645 = vrot.lane.b32.xlu1 %v641_v35, %s1174_s16 }
 0x2f1   : > { %671 = vrot.lane.b32.xlu1 %v641_v35, %s1175_s12 }
 0x2f5   : > { %699 = vrot.lane.b32.xlu1 %v641_v35, %s1176_s23 }
 0x2f9   : > { %725 = vrot.lane.b32.xlu1 %v641_v35, %s1177_s19 }
 0x2fd   : > { %715 = vrot.lane.b32.xlu1 %v641_v35, %s1178_s25  ;;  %s993_s25 = sshll.u32 %s1249_s9, 7  ;;  %s1182_s9 = smov [#allocation6]  }
 0x2fe   : > { %s1616_s24 = scalar_lea.hbm %s1668_s8, %s993_s25  ;;  %s1107_s12 = sshll.u32 %s1182_s9, 4  ;;  %s1108_s12 = int_to_ptr.vmem [resolvable:$false] %s1107_s12 }
 0x2ff   : > { %s1109_s23 = scalar_lea.vmem %s1108_s12, 256 }
 0x301   : > { %741 = vrot.lane.b32.xlu1 %v641_v35, %s1179_s15  ;;  %s1678_s15 = sshll.u32 %s1333_s13, 3 }
 0x302   : > { %s321_s22 = scalar_lea.vmem [#allocation6], %s1678_s15 }
 0x303   : > { %s900_s10 = sshll.u32 %s321_s22, 4  ;;  %s1618_s10 = int_to_ptr.vmem [resolvable:$true] %s900_s10 }
 0x304   : > { %s1103_s16 = scalar_lea.vmem %s1618_s10, 128  ;;  %p1110_p7 = scmp.lt.s32.totalorder %s1618_s10, %s1108_s12 }
 0x305   : > { %p1104_p6 = scmp.ne.s32.totalorder %s1618_s10, %s1103_s16  ;;  %p1111_p10 = scmp.lt.s32.totalorder %s1109_s23, %s1103_s16 }
 0x307   : > { %p1105_p12 = pnand %p1104_p6, %p1679_p11  ;;  %p1112_p2 = por %p1111_p10, %p1110_p7 }
 0x309   : > { %p1106_p13 = pneg %p1105_p12 }
 0x30b   : > { %p1113_p4 = pnand %p1112_p2, %p1106_p13 }
 0x34b   : > { %v654_v36 = vpop.permute.xlu1 %653  ;;  %v670_v52 = vpop.permute.xlu0 %669 }
 0x34f   : > { %v656_v37 = vpop.permute.xlu1 %655  ;;  %v698_v58 = vpop.permute.xlu0 %697 }
 0x350   : > { %v657_v38 = vsel %vm356_vm2, %v654_v36, %v656_v37  ;;  %v658_v39 = vsel %vm356_vm2, %v656_v37, %v654_v36 }
 0x351   : > { %v659_v40 = vmul.f32 %v658_v39, %v1423_v24  ;;  %v660_v41 = vmul.f32 %v657_v38, %v1426_v25 }
 0x353   : > { %v663_v42 = vrot.slane %v659_v40, 4  ;;  %v664_v43 = vrot.slane %v660_v41, 4  ;;  %v680_v44 = vpop.permute.xlu1 %679  ;;  %v724_v3 = vpop.permute.xlu0 %723 }
 0x355   : > { %667 = vst [vmem:[#allocation2] sm:$0xf0] %v663_v42  ;;  %668 = vst [vmem:[#allocation2 + $0x8] sm:$0xf0] %v664_v43 }
 0x357   : > { %v682_v45 = vpop.permute.xlu1 %681  ;;  %v714_v17 = vpop.permute.xlu0 %713 }
 0x358   : > { %v683_v46 = vsel %vm400_vm0, %v680_v44, %v682_v45  ;;  %v684_v47 = vsel %vm400_vm0, %v682_v45, %v680_v44 }
 0x359   : > { %v685_v48 = vmul.f32 %v684_v47, %v1401_v12  ;;  %v686_v49 = vmul.f32 %v683_v46, %v1404_v13 }
 0x35b   : > { %v689_v24 = vrot.slane %v685_v48, 4  ;;  %v690_v53 = vrot.slane %v686_v49, 4  ;;  %v644_v25 = vpop.permute.xlu1 %643  ;;  %v740_v35 = vpop.permute.xlu0 %739 }
 0x35d   : > { %693 = vst [vmem:[#allocation2 + $0x10] sm:$0xf0] %v689_v24  ;;  %694 = vst [vmem:[#allocation2 + $0x18] sm:$0xf0] %v690_v53 }
 0x35f   : > { %v646_v54 = vpop.permute.xlu1 %645 }
 0x360   : > { %v647_v55 = vsel %vm337_vm1, %v644_v25, %v646_v54  ;;  %v648_v57 = vsel %vm337_vm1, %v646_v54, %v644_v25 }
 0x361   : > { %v649_v60 = vmul.f32 %v648_v57, %v1415_v20  ;;  %v650_v12 = vmul.f32 %v647_v55, %v1418_v21 }
 0x363   : > { %651 = vst [vmem:[#allocation2] sm:$0xf] %v649_v60  ;;  %652 = vst [vmem:[#allocation2 + $0x8] sm:$0xf] %v650_v12  ;;  %v672_v13 = vpop.permute.xlu1 %671 }
 0x364   : > { %v673_v61 = vsel %vm381_vm3, %v670_v52, %v672_v13  ;;  %v674_v62 = vsel %vm381_vm3, %v672_v13, %v670_v52 }
 0x365   : > { %v675_v63 = vmul.f32 %v674_v62, %v1431_v31  ;;  %v676_v2 = vmul.f32 %v673_v61, %v1434_v32  ;;  %v839_v62 = vld [vmem:[%s1665_s5] sm:$0xf] }
 0x367   : > { %677 = vst [vmem:[#allocation2 + $0x10] sm:$0xf] %v675_v63  ;;  %678 = vst [vmem:[#allocation2 + $0x18] sm:$0xf] %v676_v2  ;;  %v700_v6 = vpop.permute.xlu1 %699 }
 0x368   : > { %v701_v20 = vsel %vm427_vm4, %v698_v58, %v700_v6  ;;  %v702_v21 = vsel %vm427_vm4, %v700_v6, %v698_v58 }
 0x369   : > { %v703_v9 = vmul.f32 %v701_v20, %v1457_v50  ;;  %v704_v10 = vmul.f32 %v702_v21, %v1460_v51 }
 0x36a   : > { %v750_v22 = vld [vmem:[#allocation2 + $0x8] sm:$0xff]  ;;  %v749_v23 = vld [vmem:[#allocation2] sm:$0xff] }
 0x36b   : > { %v707_v14 = vrot.slane %v703_v9, 4  ;;  %v708_v15 = vrot.slane %v704_v10, 4  ;;  %v726_v16 = vpop.permute.xlu1 %725 }
 0x36c   : > { %v727_v31 = vsel %vm471_vm5, %v724_v3, %v726_v16  ;;  %v728_v32 = vsel %vm471_vm5, %v726_v16, %v724_v3  ;;  %v840_v3 = vld [vmem:[%s1666_s6] sm:$0xf] }
 0x36d   : > { %711 = vst [vmem:[#allocation2 + $0x20] sm:$0xf0] %v707_v14  ;;  %712 = vst [vmem:[#allocation2 + $0x28] sm:$0xf0] %v708_v15  ;;  %v729_v18 = vmul.f32 %v727_v31, %v1468_v56  ;;  %v730_v19 = vmul.f32 %v728_v32, %v1473_v59 }
 0x36e   : > { %v752_v50 = vld [vmem:[#allocation2 + $0x18] sm:$0xff]  ;;  %v751_v51 = vld [vmem:[#allocation2 + $0x10] sm:$0xff] }
 0x36f   : > { %v733_v26 = vrot.slane %v729_v18, 4  ;;  %v734_v27 = vrot.slane %v730_v19, 4  ;;  %v716_v28 = vpop.permute.xlu1 %715  ;;  %v1002_v7 = vpack.c.bf16 %v752_v50, %v750_v22  ;;  %v1004_v8 = vpack.c.bf16 %v751_v51, %v749_v23 }
 0x370   : > { %v717_v29 = vsel %vm452_vm6, %v714_v17, %v716_v28  ;;  %v718_v34 = vsel %vm452_vm6, %v716_v28, %v714_v17 }
 0x371   : > { %737 = vst [vmem:[#allocation2 + $0x30] sm:$0xf0] %v733_v26  ;;  %738 = vst [vmem:[#allocation2 + $0x38] sm:$0xf0] %v734_v27  ;;  %v719_v56 = vmul.f32 %v717_v29, %v1484_v4  ;;  %v720_v59 = vmul.f32 %v718_v34, %v1487_v11  ;;  %1003 = vmatprep.subr.bf16.mxu1 %v1002_v7 }
 0x372   : > { %1005 = vmatpush1.bf16.msra.mxu1 %v1004_v8 }
 0x373   : > { %721 = vst [vmem:[#allocation2 + $0x30] sm:$0xf] %v719_v56  ;;  %722 = vst [vmem:[#allocation2 + $0x38] sm:$0xf] %v720_v59  ;;  %v742_v36 = vpop.permute.xlu1 %741 }
 0x374   : > { %v743_v37 = vsel %vm496_vm7, %v740_v35, %v742_v36  ;;  %v744_v38 = vsel %vm496_vm7, %v742_v36, %v740_v35  ;;  %v754_v4 = vld [vmem:[#allocation2 + $0x28] sm:$0xff]  ;;  %v753_v41 = vld [vmem:[#allocation2 + $0x20] sm:$0xff] }
 0x375   : > { %v745_v39 = vmul.f32 %v1499_v30, %v743_v37  ;;  %v746_v40 = vmul.f32 %v1504_v33, %v744_v38 }
 0x377   : > { %747 = vst [vmem:[#allocation2 + $0x40] sm:$0xf] %v745_v39  ;;  %748 = vst [vmem:[#allocation2 + $0x48] sm:$0xf] %v746_v40 }
 0x37a   : > { %v756_v11 = vld [vmem:[#allocation2 + $0x38] sm:$0xff]  ;;  %v755_v42 = vld [vmem:[#allocation2 + $0x30] sm:$0xff] }
 0x37b   : > { %v1006_v43 = vpack.c.bf16 %v756_v11, %v754_v4  ;;  %v1008_v44 = vpack.c.bf16 %v755_v42, %v753_v41 }
 0x37d   : > { %1007 = vmatprep.subr.bf16.mxu1 %v1006_v43 }
 0x37e   : > { %1009 = vmatpush1.bf16.msra.mxu1 %v1008_v44  ;;  %v758_v45 = vld [vmem:[#allocation2 + $0x48] sm:$0xf]  ;;  %v757_v30 = vld [vmem:[#allocation2 + $0x40] sm:$0xf] }
 0x37f   : > { %984 = vmatprep.subr.msk.mxu1 %vm525_vm8, %v758_v45 }
 0x382   : > { %985 = vmatpush1.msk.msra.mxu1 %vm525_vm8, %v757_v30 }
 0x383   : > { %986 = vmatmul.mubr.msk.f32.vlgmr.msra.gmra.mrb[0].mxu1 %vm521_vm9, %v642_v5 }
 0x456   : > { %v834_v33 = vpop.f32.mrb[0].mxu1 }
 0x457   : > { %v846_v46 = vmul.f32 %v834_v33, %v834_v33  ;;  %v836_v47 = vpop.f32.mrb[1].mxu1  ;;  %v841_v48 = vsel %vm525_vm8, %v834_v33, 0.0 }
 0x458   : > { %v842_v49 = vsel %vm525_vm8, %v836_v47, 0.0  ;;  %v847_v52 = vmul.f32 %v836_v47, %v836_v47 }
 0x459   : > { %v843_v24 = vadd.f32 %v842_v49, %v841_v48  ;;  %v848_v53 = vsel %vm525_vm8, %v846_v46, 0.0 }
 0x45a   : > { %v849_v25 = vsel %vm525_vm8, %v847_v52, 0.0 }
 0x45b   : > { %844 = vadd.xlane.f32.xlu0 %v843_v24  ;;  %v850_v54 = vadd.f32 %v849_v25, %v848_v53 }
 0x45d   : > { %851 = vadd.xlane.f32.xlu1 %v850_v54 }
 0x4e8   : > { %v845_v55 = vpop.xlane.xlu0 %844 }
 0x4e9   : > { %v853_v57 = vmul.f32 0.00390625, %v845_v55 }
 0x4ea   : > { %v852_v58 = vpop.xlane.xlu1 %851 }
 0x4eb   : > { %v855_v60 = vmul.f32 %v853_v57, %v853_v57  ;;  %v854_v12 = vmul.f32 0.00390625, %v852_v58 }
 0x4ed   : > { %v856_v13 = vsub.f32 %v854_v12, %v855_v60 }
 0x4ef   : > { %v857_v61 = vadd.f32 1e-05, %v856_v13 }
 0x4f1   : > { %1071 = vrsqrt.f32 %v857_v61 }
 0x4fb   : > { %v1072_v63 = vpop.eup %1071 }
 0x4fc   : > { %v859_v2 = vmul.f32 %v1072_v63, %v839_v62 }
 0x4fe   : > { %864 = vperm.xlu0 %1066, %v859_v2   ;;  %v860_v6 = vmul.f32 %v859_v2, %v853_v57 }
 0x500   : > { %v861_v20 = vsub.f32 %v840_v3, %v860_v6 }
 0x502   : > { %871 = vperm.xlu1 %1067, %v861_v20  }
 0x57d   : > { %v865_v21 = vpop.permute.xlu0 %864 }
 0x57e   : > { %v867_v9 = vmul.f32 %v865_v21, %v834_v33  ;;  %v868_v10 = vmul.f32 %v865_v21, %v836_v47 }
 0x581   : > { %v872_v14 = vpop.permute.xlu1 %871 }
 0x582   : > { %v874_v15 = vadd.f32 %v872_v14, %v867_v9  ;;  %v875_v16 = vadd.f32 %v872_v14, %v868_v10 }
 0x584   : > { %v876_v31 = vadd.f32 %v874_v15, %v1343_v0  ;;  %v877_v32 = vadd.f32 %v875_v16, %v1352_v1 }
 0x586   : > { %v878_v17 = vmax.f32 %v876_v31, 0.0  ;;  %v879_v18 = vmax.f32 %v877_v32, 0.0 }
 0x588   : > { %v882_v19 = vcombine.low %v878_v17, %v879_v18 }
 0x58a   : > { %884 = vst [vmem:[%s321_s22] sm:$0xff] %v882_v19 }
 0x58b   : > { %1116 = shalt.err (!%p1113_p4)
}
 0x58c   : > { %s1117_s13 = scalar_lea.hbm %s1616_s24, 128  ;;  %s1121_s15 = scalar_lea.hbm %s1668_s8, 256 }
 0x58d   : > { %p1118_p5 = scmp.ne.s32.totalorder %s1616_s24, %s1117_s13  ;;  %p1122_p0 = scmp.lt.u32.totalorder %s1616_s24, %s1668_s8 }
 0x58e   : > { %p1123_p1 = scmp.lt.u32.totalorder %s1121_s15, %s1117_s13  ;;  %p1125_p6 = scmp.lt.u32.totalorder %s1117_s13, %s1616_s24 }
 0x58f   : > { %p1119_p8 = pnand %p1118_p5, %p1679_p11 }
 0x590   : > { %p1124_p3 = por %p1123_p1, %p1122_p0 }
 0x591   : > { %p1120_p9 = pneg %p1119_p8 }
 0x592   : > { %p1126_p12 = por %p1125_p6, %p1124_p3 }
 0x594   : > { %p1127_p13 = pnand %p1126_p12, %p1120_p9 }
 0x596   : > { %1130 = shalt.err (!%p1127_p13)
}
 0x597   : > { %1012 = dma.vmem_to_hbm [thread:$0]  (%p1679_p11), %s1618_s10, 128, %s1616_s24, %s886_s26  }
 0x598 PF: > { %s912_s20 = sand.u32 1, %s1157_s27   ;;  %p1680_p7 = scmp.ne.s32.totalorder %s1674_s18, 0 }
 0x599   : > { %p1681_p10 = scmp.ge.s32.totalorder %s1169_s30, 2  ;;  %s913_s16 = scalar_lea.sflag [#allocation5], %s912_s20 }
 0x59b   : > { %p1019_p2 = pnand %p1681_p10, %p1680_p7 }
 0x59d   : > { %1152 = dma.done.wait (!%p1019_p2), %s913_s16, 128  }
 0x59e   : > { %1154 = vsyncadd (!%p1019_p2), %s913_s16, 4294967168  ;;  %p21_p4 = scmp.ge.s32.totalorder %s1253_s11, 4   ;;  %s1682_s27 = smov %s1161_s28 }
 0x59f   : > { %s1683_s28 = smov %s1165_s29  ;;  %s1684_s29 = smov %s1265_s14 }
 0x5a0   : > { %s1685_s30 = smov %s1253_s11  ;;  %23 = sbr.rel (!%p21_p4) target bundleno = 5 (0x5), region = 97 }
 0x5a7   :  { %918 = vsyncpa [#allocation4], 1 }
 0x5a8   :  { %920 = vsyncpa [#allocation4 + $0x1], 1 }
 0x5a9   :  { %921 = vsyncpa [#allocation5], 1 }
 0x5aa   :  { %923 = vsyncpa [#allocation5 + $0x1], 1 }

</bundles_post_ra>
